<compile_context>
chip_gen: v5e
topology: v5e:2x2
jax: 0.10.0
libtpu: 0.0.40
codegen_flags: <defaults>
</compile_context>

<pallas_src>
import functools

import jax
import jax.numpy as jnp
from jax.experimental import pallas as pl
from jax.experimental.pallas import tpu as pltpu

N_FEATS = 8  # GSA(n_feats); input has 2*n_feats channels


def _prelu(x, a):
    # torch.nn.PReLU(): f(x) = max(0, x) + a * min(0, x)
    return jnp.where(x >= 0, x, a * x)


# ----------------------------------------------------------------------------
# fused GSA kernel: Bt images per grid step, channel-major (Bt, C, HW) tiles
# ----------------------------------------------------------------------------
def _gsa_kernel(x_ref, p_ref, a_ref, o_ref, *, n_feats, inv_hw):
    F = n_feats
    C2 = 2 * F
    C4 = 4 * F

    xb = x_ref[...]                               # (Bt, 2F, HWp) f32
    P = p_ref[...]                                # packed params (C2+C4+F+3, C4)

    # static views into the packed parameter block (all column slices start at 0)
    w1t = P[0:C2, :]                              # (2F, 4F)  Linear1 weight, transposed
    w2t = P[C2:C2 + C4, 0:C2]                     # (4F, 2F)  Linear2 weight, transposed
    wc = P[C2 + C4:C2 + C4 + F, 0:C2]             # (F, 2F)   conv1x1 weight
    r = C2 + C4 + F
    b1 = P[r:r + 1, :]                            # (1, 4F)
    b2 = P[r + 1:r + 2, 0:C2]                     # (1, 2F)
    bc = P[r + 2:r + 3, 0:F]                      # (1, F)

    # adaptive_avg_pool2d(x, (1,1)) -> per-channel spatial mean (padding cols are 0)
    pooled = jnp.sum(xb, axis=2) * inv_hw         # (Bt, 2F)

    # F_f: Linear(2F,4F) -> PReLU -> Linear(4F,2F) -> Sigmoid (row-oriented, lane-dense)
    h = jnp.dot(pooled, w1t, preferred_element_type=jnp.float32) + b1
    h = _prelu(h, a_ref[0])                       # (Bt, 4F)
    g = jax.nn.sigmoid(
        jnp.dot(h, w2t, preferred_element_type=jnp.float32) + b2)   # (Bt, 2F) gate

    gated = xb * g[:, :, None]                    # broadcast gate over the HW lanes

    # condense = conv1x1(2F -> F) as a batched matmul so the result is natively
    # (Bt, F, HW) -- no (F, Bt, HW) -> (Bt, F, HW) transpose needed.
    Bt = xb.shape[0]
    wc_b = jnp.broadcast_to(wc, (Bt, F, C2))
    out = jnp.einsum("boc,bcl->bol", wc_b, gated,
                     preferred_element_type=jnp.float32)            # (Bt, F, HWp)
    out = out + bc[:, :, None]
    out = _prelu(out, a_ref[1])                   # final PReLU

    o_ref[...] = out.astype(o_ref.dtype)


# ----------------------------------------------------------------------------
# host-side helpers
# ----------------------------------------------------------------------------
def _pack_params(p, n_feats):
    """Pack the 6 tiny parameter tensors into one (C2+C4+F+3, C4) f32 block."""
    F = n_feats
    C2, C4 = 2 * F, 4 * F
    rows = C2 + C4 + F + 3
    P = jnp.zeros((rows, C4), dtype=jnp.float32)
    P = P.at[0:C2, :].set(p["w1"].T)                       # (2F, 4F)
    P = P.at[C2:C2 + C4, 0:C2].set(p["w2"].T)              # (4F, 2F)
    P = P.at[C2 + C4:C2 + C4 + F, 0:C2].set(p["wc"])       # (F, 2F)
    r = C2 + C4 + F
    P = P.at[r, :].set(p["b1"])                            # (4F,)
    P = P.at[r + 1, 0:C2].set(p["b2"])                     # (2F,)
    P = P.at[r + 2, 0:F].set(p["bc"])                      # (F,)
    return P


def _pick_bt(B, C2, F, HWp, max_bt=64, act_budget_bytes=8 << 20):
    """Images per grid step: amortize per-step overhead, stay inside scoped VMEM,
    and keep >= 2 grid steps so both v7x TensorCores get work under 'parallel'."""
    per_img = 2 * (C2 + F) * HWp * 4          # double-buffered in+out bytes per image
    cap = max(1, min(max_bt, act_budget_bytes // per_img))
    if B >= 2:
        cap = min(cap, max(1, B // 2))
    return max(1, min(cap, B))


def gsa_forward(x_nchw, p):
    B, C2, H, W = x_nchw.shape
    F = C2 // 2
    C4 = 4 * F
    HW = H * W
    HWp = ((HW + 127) // 128) * 128            # lane-dense stores for arbitrary H*W

    x3 = x_nchw.reshape(B, C2, HW)             # NCHW -> channel-major, no transpose
    if HWp != HW:
        x3 = jnp.pad(x3, ((0, 0), (0, 0), (0, HWp - HW)))

    Bt = _pick_bt(B, C2, F, HWp)
    n_steps = pl.cdiv(B, Bt)
    Bp = n_steps * Bt
    if Bp != B:
        x3 = jnp.pad(x3, ((0, Bp - B), (0, 0), (0, 0)))

    P = _pack_params(p, F)

    kernel = functools.partial(_gsa_kernel, n_feats=F, inv_hw=1.0 / HW)

    # Explicit scoped-VMEM ceiling (documents the per-chip budget; v5e default 16 MiB
    # is the first one hit). Activations are double-buffered in+out per step.
    act_bytes = 2 * Bt * (C2 + F) * HWp * 4
    par_bytes = 2 * P.size * 4
    vmem_limit = int(max(16 << 20, 2 * (act_bytes + par_bytes) + (1 << 20)))

    cost = pl.CostEstimate(
        flops=int(2 * B * HW * C2 * F            # conv1x1
                  + 2 * B * (C2 * C4 + C4 * C2)  # gate linears
                  + 4 * B * C2 * HW),            # pool + gating elementwise
        transcendentals=int(B * C2),             # sigmoid
        bytes_accessed=int(B * (C2 + F) * HW * 4 + P.size * 4),
    )

    out = pl.pallas_call(
        kernel,
        out_shape=jax.ShapeDtypeStruct((Bp, F, HWp), jnp.float32),
        grid=(n_steps,),
        in_specs=[
            pl.BlockSpec((Bt, C2, HWp), lambda g: (g, 0, 0)),           # activations
            pl.BlockSpec((P.shape[0], P.shape[1]), lambda g: (0, 0)),   # packed params
            pl.BlockSpec(memory_space=pltpu.MemorySpace.SMEM),          # PReLU slopes
        ],
        out_specs=pl.BlockSpec((Bt, F, HWp), lambda g: (g, 0, 0)),
        compiler_params=pltpu.CompilerParams(
            dimension_semantics=("parallel",),
            vmem_limit_bytes=vmem_limit,
        ),
        cost_estimate=cost,
    )(x3, P, p["prelu"])

    return out[:B, :, :HW].reshape(B, F, H, W)  # already NCHW, no transpose


# ----------------------------------------------------------------------------
# parameters (deterministic synthetic init; PyTorch (out, in) weight layout)
# ----------------------------------------------------------------------------
def init_params(key, n_feats=N_FEATS):
    F = n_feats
    C2 = 2 * F
    ks = jax.random.split(key, 6)

    def w(k, shape, scale=0.1):
        return (scale * jax.random.normal(k, shape)).astype(jnp.float32)

    return {
        # GSA.F_f = Linear(2F,4F) -> PReLU -> Linear(4F,2F) -> Sigmoid
        "w1": w(ks[0], (4 * F, C2)), "b1": w(ks[1], (4 * F,), 0.05),
        "w2": w(ks[2], (C2, 4 * F)), "b2": w(ks[3], (C2,), 0.05),
        # GSA.condense = conv1x1(2F, F)
        "wc": w(ks[4], (F, C2)), "bc": w(ks[5], (F,), 0.05),
        # nn.PReLU() default slope 0.25 (F_f internal, final act)
        "prelu": jnp.array([0.25, 0.25], dtype=jnp.float32),
    }


# ----------------------------------------------------------------------------
# pure-JAX reference (for correctness check in __main__)
# ----------------------------------------------------------------------------
def gsa_reference(x_nchw, p):
    pooled = jnp.mean(x_nchw, axis=(2, 3))                        # (B, 2F)
    h = pooled @ p["w1"].T + p["b1"]
    h = jnp.where(h >= 0, h, p["prelu"][0] * h)
    g = jax.nn.sigmoid(h @ p["w2"].T + p["b2"])                   # (B, 2F)
    gated = x_nchw * g[:, :, None, None]
    out = jnp.einsum("oc,bchw->bohw", p["wc"], gated) + p["bc"][None, :, None, None]
    return jnp.where(out >= 0, out, p["prelu"][1] * out)


if __name__ == "__main__":
    key = jax.random.PRNGKey(0)
    kx, kp = jax.random.split(key)
    n_feats = N_FEATS
    # PyTorch-style NCHW input with 2*n_feats channels (GSA's F_f expects 2*n_feats)
    x = jax.random.normal(kx, (2, 2 * n_feats, 16, 16), dtype=jnp.float32)
    params = init_params(kp, n_feats)

    fwd = jax.jit(gsa_forward)
    out = fwd(x, params)
    jax.block_until_ready(out)

    assert out.shape == (2, n_feats, 16, 16) and out.dtype == jnp.float32
    ref = gsa_reference(x, params)
    err = float(jnp.max(jnp.abs(out - ref)))
    assert err < 1e-4, f"mismatch vs pure-JAX reference: {err}"
    print("KERNEL_OK")
</pallas_src>

<mosaic_0001>
module attributes {stable_mosaic.version = 11 : i64} {
  func.func @_gsa_kernel(%arg0: i32, %arg1: memref<1x16x256xf32, #tpu.memory_space<vmem>>, %arg2: memref<59x32xf32, #tpu.memory_space<vmem>>, %arg3: memref<2xf32, #tpu.memory_space<smem>>, %arg4: memref<1x8x256xf32, #tpu.memory_space<vmem>>) attributes {dimension_semantics = [#tpu.dimension_semantics<parallel>], iteration_bounds = array<i64: 2>, scalar_prefetch = 0 : i64, scratch_operands = 0 : i64, tpu.core_type = #tpu.core_type<tc>, window_params = [{transform_indices = @transform_0, window_bounds = array<i64: 1, 16, 256>}, {pipeline_mode = #tpu.pipeline_mode<synchronous>, transform_indices = @transform_1, window_bounds = array<i64: 59, 32>}, {transform_indices = @transform_2, window_bounds = array<i64: 2>}, {transform_indices = @transform_3, window_bounds = array<i64: 1, 8, 256>}]} {
    %c0 = arith.constant 0 : index
    %c0_0 = arith.constant 0 : index
    %c0_1 = arith.constant 0 : index
    %0 = vector.load %arg1[%c0, %c0_0, %c0_1] : memref<1x16x256xf32, #tpu.memory_space<vmem>>, vector<1x16x256xf32>
    %c0_2 = arith.constant 0 : index
    %c0_3 = arith.constant 0 : index
    %1 = vector.load %arg2[%c0_2, %c0_3] : memref<59x32xf32, #tpu.memory_space<vmem>>, vector<59x32xf32>
    %2 = vector.extract_strided_slice %1 {offsets = [0, 0], sizes = [16, 32], strides = [1, 1]} : vector<59x32xf32> to vector<16x32xf32>
    %3 = vector.extract_strided_slice %1 {offsets = [16, 0], sizes = [32, 16], strides = [1, 1]} : vector<59x32xf32> to vector<32x16xf32>
    %4 = vector.extract_strided_slice %1 {offsets = [48, 0], sizes = [8, 16], strides = [1, 1]} : vector<59x32xf32> to vector<8x16xf32>
    %5 = vector.extract_strided_slice %1 {offsets = [56, 0], sizes = [1, 32], strides = [1, 1]} : vector<59x32xf32> to vector<1x32xf32>
    %6 = vector.extract_strided_slice %1 {offsets = [57, 0], sizes = [1, 16], strides = [1, 1]} : vector<59x32xf32> to vector<1x16xf32>
    %7 = vector.extract_strided_slice %1 {offsets = [58, 0], sizes = [1, 8], strides = [1, 1]} : vector<59x32xf32> to vector<1x8xf32>
    %cst = arith.constant dense<0.000000e+00> : vector<1x16xf32>
    %8 = vector.multi_reduction <add>, %0, %cst [2] : vector<1x16x256xf32> to vector<1x16xf32>
    %cst_4 = arith.constant 3.906250e-03 : f32
    %9 = vector.broadcast %cst_4 : f32 to vector<1x16xf32>
    %10 = arith.mulf %8, %9 : vector<1x16xf32>
    %cst_5 = arith.constant dense<0.000000e+00> : vector<1x32xf32>
    %11 = tpu.matmul %10, %2, %cst_5 {dimension_numbers = #tpu.dot_dimension_numbers<[1], [0], [0], [1], [0, 0, 1, 1], [], []>} : vector<1x16xf32>, vector<16x32xf32>, vector<1x32xf32> -> vector<1x32xf32>
    %12 = arith.addf %11, %5 : vector<1x32xf32>
    %c0_6 = arith.constant 0 : index
    %13 = memref.load %arg3[%c0_6] : memref<2xf32, #tpu.memory_space<smem>>
    %cst_7 = arith.constant 0.000000e+00 : f32
    %14 = vector.broadcast %cst_7 : f32 to vector<1x32xf32>
    %15 = arith.cmpf oge, %12, %14 : vector<1x32xf32>
    %16 = vector.broadcast %13 : f32 to vector<1x32xf32>
    %17 = arith.mulf %16, %12 : vector<1x32xf32>
    %18 = arith.select %15, %12, %17 : vector<1x32xi1>, vector<1x32xf32>
    %cst_8 = arith.constant dense<0.000000e+00> : vector<1x16xf32>
    %19 = tpu.matmul %18, %3, %cst_8 {dimension_numbers = #tpu.dot_dimension_numbers<[1], [0], [0], [1], [0, 0, 1, 1], [], []>} : vector<1x32xf32>, vector<32x16xf32>, vector<1x16xf32> -> vector<1x16xf32>
    %20 = arith.addf %19, %6 : vector<1x16xf32>
    %21 = arith.negf %20 : vector<1x16xf32>
    %22 = math.exp %21 : vector<1x16xf32>
    %cst_9 = arith.constant 1.000000e+00 : f32
    %23 = vector.broadcast %cst_9 : f32 to vector<1x16xf32>
    %24 = arith.addf %23, %22 : vector<1x16xf32>
    %25 = arith.divf %23, %24 : vector<1x16xf32>
    %26 = vector.shape_cast %25 : vector<1x16xf32> to vector<1x16x1xf32>
    %27 = vector.broadcast %26 : vector<1x16x1xf32> to vector<1x16x256xf32>
    %28 = arith.mulf %0, %27 : vector<1x16x256xf32>
    %29 = vector.shape_cast %4 : vector<8x16xf32> to vector<1x8x16xf32>
    "tpu.trace_start"() <{level = 10 : i32, message = "boc,bcl->bol"}> : () -> ()
    %cst_10 = arith.constant dense<0.000000e+00> : vector<1x8x256xf32>
    %30 = tpu.matmul %29, %28, %cst_10 {dimension_numbers = #tpu.dot_dimension_numbers<[2], [1], [1], [2], [0, 0, 0, 1, 1, 2], [0], [0]>} : vector<1x8x16xf32>, vector<1x16x256xf32>, vector<1x8x256xf32> -> vector<1x8x256xf32>
    "tpu.trace_stop"() : () -> ()
    %31 = vector.shape_cast %7 : vector<1x8xf32> to vector<1x8x1xf32>
    %32 = vector.broadcast %31 : vector<1x8x1xf32> to vector<1x8x256xf32>
    %33 = arith.addf %30, %32 : vector<1x8x256xf32>
    %c1 = arith.constant 1 : index
    %34 = memref.load %arg3[%c1] : memref<2xf32, #tpu.memory_space<smem>>
    %cst_11 = arith.constant 0.000000e+00 : f32
    %35 = vector.broadcast %cst_11 : f32 to vector<1x8x256xf32>
    %36 = arith.cmpf oge, %33, %35 : vector<1x8x256xf32>
    %37 = vector.broadcast %34 : f32 to vector<1x8x256xf32>
    %38 = arith.mulf %37, %33 : vector<1x8x256xf32>
    %39 = arith.select %36, %33, %38 : vector<1x8x256xi1>, vector<1x8x256xf32>
    %c0_12 = arith.constant 0 : index
    %c0_13 = arith.constant 0 : index
    %c0_14 = arith.constant 0 : index
    %40 = vector.load %arg4[%c0_12, %c0_13, %c0_14] : memref<1x8x256xf32, #tpu.memory_space<vmem>>, vector<1x8x256xf32>
    tpu.vector_store %arg4[%c0_12, %c0_13, %c0_14], %39 {strides = array<i32>} : memref<1x8x256xf32, #tpu.memory_space<vmem>>, vector<1x8x256xf32>,
    return
  }
  func.func @transform_0(%arg0: i32) -> (i32, i32, i32) {
    %c0_i32 = arith.constant 0 : i32
    %c0_i32_0 = arith.constant 0 : i32
    %c0_i32_1 = arith.constant 0 : i32
    return %arg0, %c0_i32, %c0_i32_0 : i32, i32, i32
  }
  func.func @transform_1(%arg0: i32) -> (i32, i32) {
    %c0_i32 = arith.constant 0 : i32
    %c0_i32_0 = arith.constant 0 : i32
    %c0_i32_1 = arith.constant 0 : i32
    return %c0_i32, %c0_i32_0 : i32, i32
  }
  func.func @transform_2(%arg0: i32) -> i32 {
    %c0_i32 = arith.constant 0 : i32
    %c0_i32_0 = arith.constant 0 : i32
    return %c0_i32 : i32
  }
  func.func @transform_3(%arg0: i32) -> (i32, i32, i32) {
    %c0_i32 = arith.constant 0 : i32
    %c0_i32_0 = arith.constant 0 : i32
    %c0_i32_1 = arith.constant 0 : i32
    return %arg0, %c0_i32, %c0_i32_0 : i32, i32, i32
  }
}

</mosaic_0001>

<bundles_post_ra>
// kernel: gsa_forward.1
= control target key start
LH: loop header
LB: loop body
LE: loop exit
PB: predicated region body
PF: predicated region fallthrough
CT: control target
= control target key end

     0   :  { %8 = vsyncpa [#allocation3], 0  ;;  %s528_s12 = smov 0   ;;  %s595_s0 = inlined_call_operand.vmem [shape: f32[2,16,256], index: 0, kind: input, shape index: {}]   ;;  %s596_s1 = inlined_call_operand.vmem [shape: f32[59,32], index: 1, kind: input, shape index: {}]   ;;  %s597_s2 = inlined_call_operand.vmem [shape: f32[2], index: 2, kind: input, shape index: {}]   ;;  %s598_s3 = inlined_call_operand.vmem [shape: f32[2,8,256], index: 3, kind: output, shape index: {}]  }
   0x1 LB: > { %s432_s13 = sadd.s32 4294967295, %s505_s12   ;;  %p434_p0 = scmp.ge.s32.totalorder %s505_s12, 1  ;;  %s505_s12 = sphi %s528_s12, %s14_s12  }
   0x2   : > { %p113_p1 = scmp.lt.s32.totalorder %s505_s12, 3  ;;  %s128_s16 = sshll.u32 %s597_s2, 4  ;;  %s129_s16 = int_to_ptr.vmem [resolvable:$true] %s128_s16 }
   0x3   : > { %p461_p3 = scmp.eq.s32.totalorder %s432_s13, 0  ;;  %s507_s17 = smov [#allocation2]  }
   0x4   : > { %p114_p2 = pnand %p434_p0, %p113_p1 }
   0x6   : > { %p457_p4 = pneg %p114_p2  ;;  %149 = sbr.rel (%p114_p2) target bundleno = 713 (0x2c9), region = 32 }
   0x8   : > { %p458_p5 = pnand %p461_p3, %p457_p4 }
   0xa   : > { %460 = dma.vmem_to_smem (!%p458_p5), %s129_s16, 16, %s507_s17, [#allocation3]  }
   0xb   : > { %500 = dma.done.wait (%p461_p3), [#allocation3], 16  }
   0xc   : > { %502 = vsyncadd (%p461_p3), [#allocation3], 4294967280 }
   0xd   : > { %156 = sfence }
   0xe   : > { %p175_p6 = scmp.lt.s32.totalorder %s432_s13, 1  ;;  %v190_v6 = vld [vmem:[%s596_s1 + $0x8] sm:$0xff]  ;;  %v189_v7 = vld [vmem:[%s596_s1] sm:$0xff]  ;;  %v207_v10 = vlaneseq  ;;  %vm212_vm0 = vcmask 130112   ;;  %vm214_vm1 = vcmask 130048   ;;  %v192_v20 = vld [vmem:[%s596_s1 + $0x18] sm:$0xff] }
   0xf   : > { %231 = vmatpush.msra.mxu0 %v190_v6  ;;  %v194_v8 = vld [vmem:[%s596_s1 + $0x28] sm:$0xff]  ;;  %v193_v19 = vld [vmem:[%s596_s1 + $0x20] sm:$0xff]  ;;  %v191_v21 = vld [vmem:[%s596_s1 + $0x10] sm:$0xff]  ;;  %s237_s7 = sld [smem:[#allocation2]]  ;;  %vm245_vm3 = vcmask 261120  }
  0x10   : > { %s600_s13 = smov (!%p175_p6, %s432_s13), 1  ;;  %261 = vmatpush.msra.mxu1 %v194_v8  ;;  %v208_v11 = vand.u32 127, %v207_v10  ;;  %v196_v22 = vld [vmem:[%s596_s1 + $0x38] sm:$0x7]  ;;  %v290_v28 = vshrl.u32 %v207_v10, 7  ;;  %v195_v54 = vld [vmem:[%s596_s1 + $0x30] sm:$0xff] }
  0x11   : > { %s451_s18 = sshll.u32 %s600_s13, 5  ;;  %232 = vmatpush.msra.mxu0 %v189_v7  ;;  %v243_v30 = vrot.slane %v196_v22, 1  ;;  %v305_v47 = vperm.slane %v196_v22, 2  ;;  %s448_s14 = sld [smem:[#allocation2 + $0x1]] }
  0x12   : > { %s179_s21 = scalar_lea.vmem %s595_s0, %s451_s18  ;;  %v210_v13 = vadd.s32 4294967288, %v208_v11  ;;  %262 = vmatpush.msra.mxu1 %v193_v19  ;;  %v297_v29 = vadd.s32 8, %v290_v28  ;;  %474 = vset.pattern.permute.xlu2 %v290_v28  ;;  %s452_s15 = sshll.u32 %s600_s13, 4 }
  0x13   : > { %v545_v0 = vld [vmem:[%s179_s21] sm:$0xff]  ;;  %v547_v1 = vld [vmem:[%s179_s21 + $0x8] sm:$0xff]  ;;  %v551_v3 = vld [vmem:[%s179_s21 + $0x10] sm:$0xff]  ;;  %475 = vset.pattern.permute.xlu0 %v290_v28  ;;  %s184_s18 = scalar_lea.vmem %s598_s3, %s452_s15 }
  0x14   : > { %v197_v2 = vadd.f32 %v547_v1, %v545_v0  ;;  %v553_v4 = vld [vmem:[%s179_s21 + $0x18] sm:$0xff]  ;;  %263 = vmatpush.msra.mxu1 %v192_v20  ;;  %472 = vset.pattern.permute.xlu1 %v297_v29 }
  0x15   : > { %v200_v5 = vadd.f32 %v553_v4, %v551_v3  ;;  %v239_v24 = vstv %s237_s7 }
  0x16   : > { %198 = vadd.xlane.f32.xlu0 %v197_v2  ;;  %264 = vmatpush.msra.mxu1 %v191_v21 }
  0x17   : > { %v358_v57 = vstv %s448_s14 }
  0x1a   : > { %310 = vperm.xlu2 %474, %v305_v47  }
  0x1e   : > { %201 = vadd.xlane.f32.xlu0 %v200_v5 }
  0x74   : > { %v311_v55 = vpop.permute.xlu2 %310 }
  0x89   : > { %v199_v9 = vpop.xlane.xlu0 %198 }
  0x8a   : > { %v203_v12 = vmul.f32 0.00390625, %v199_v9 }
  0x8c   : > { %v209_v16 = vperm.slane %v203_v12, %v208_v11 }
  0x91   : > { %v202_v14 = vpop.xlane.xlu0 %201 }
  0x92   : > { %v204_v15 = vmul.f32 0.00390625, %v202_v14 }
  0x94   : > { %v211_v17 = vperm.slane %v204_v15, %v210_v13 }
  0x96   : > { %v213_v18 = vsel %vm212_vm0, %v211_v17, %v209_v16 }
  0x97   : > { %443 = vmatmul.msk.f32.vlgmr.msra.gmra.mxu0 %vm214_vm1, %v213_v18 }
 0x114   : > { %v234_v23 = vpop.f32.mrf.mxu0 }
 0x115   : > { %v235_v25 = vadd.f32 %v234_v23, %v196_v22 }
 0x117   : > { %v240_v26 = vmul.f32 %v239_v24, %v235_v25  ;;  %vm238_vm2 = vcmp.ge.f32.partialorder %v235_v25, 0.0 }
 0x119   : > { %v241_v27 = vsel %vm238_vm2, %v235_v25, %v240_v26 }
 0x11a   : > { %444 = vmatmul.msk.f32.vlgmr.msra.gmra.mxu1 %vm245_vm3, %v241_v27 }
 0x197   : > { %v266_v31 = vpop.f32.mrf.mxu1 }
 0x198   : > { %v267_v32 = vadd.f32 %v266_v31, %v243_v30 }
 0x19a   : > { %v445_v33 = vmul.f32 -1.442695, %v267_v32 }
 0x19c   : > { %476 = vpow2.f32 %v445_v33 }
 0x1a2   : > { %v477_v34 = vpop.eup %476 }
 0x1a3   : > { %v272_v35 = vadd.f32 1.0, %v477_v34 }
 0x1a5   : > { %478 = vrcp.f32 %v272_v35  ;;  %v284_v39 = vand.u32 2147483648, %v272_v35  ;;  %v282_v41 = vand.u32 2147483647, %v272_v35  ;;  %vm278_vm5 = vweird.f32 %v272_v35 }
 0x1a7   : > { %v285_v43 = vor.u32 1.1754944e-38, %v284_v39  ;;  %vm283_vm7 = vcmp.eq.f32.partialorder %v282_v41, 8.507059e+37 }
 0x1ab   : > { %v479_v36 = vpop.eup %478 }
 0x1ac   : > { %v274_v37 = vmul.f32 %v479_v36, %v272_v35  ;;  %vm279_vm4 = vweird.f32 %v479_v36 }
 0x1ad   : > { %vm280_vm6 = vmor %vm278_vm5, %vm279_vm4 }
 0x1ae   : > { %v275_v38 = vsub.f32 1.0, %v274_v37 }
 0x1b0   : > { %v276_v40 = vmul.f32 %v479_v36, %v275_v38 }
 0x1b2   : > { %v277_v42 = vadd.f32 %v479_v36, %v276_v40 }
 0x1b4   : > { %v281_v44 = vsel %vm280_vm6, %v479_v36, %v277_v42 }
 0x1b5   : > { %v286_v45 = vsel %vm283_vm7, %v285_v43, %v281_v44 }
 0x1b6   : > { %v288_v46 = vperm.slane %v286_v45, 0 }
 0x1b8   : > { %299 = vperm.xlu1 %472, %v288_v46  }
 0x1c0   : > { %473 = vset.pattern.permute.xlu1 %v290_v28 }
 0x1c8   : > { %293 = vperm.xlu1 %473, %v288_v46  }
 0x22a   : > { %v300_v48 = vpop.permute.xlu1 %299 }
 0x22b   : > { %v303_v49 = vmul.f32 %v300_v48, %v551_v3  ;;  %v304_v50 = vmul.f32 %v300_v48, %v553_v4 }
 0x22d   : > { %329 = vmatpush.msra.mxu2 %v303_v49  ;;  %349 = vmatpush.msra.mxu3 %v304_v50 }
 0x23a   : > { %v294_v51 = vpop.permute.xlu1 %293 }
 0x23b   : > { %v301_v52 = vmul.f32 %v294_v51, %v545_v0  ;;  %v302_v53 = vmul.f32 %v294_v51, %v547_v1 }
 0x23d   : > { %330 = vmatpush.msra.mxu2 %v301_v52  ;;  %350 = vmatpush.msra.mxu3 %v302_v53 }
 0x23e   : > { %446 = vmatmul.msk.f32.vlgmr.msra.gmra.mxu2 %vm214_vm1, %v195_v54  ;;  %447 = vmatmul.msk.f32.vlgmr.msra.gmra.mxu3 %vm214_vm1, %v195_v54 }
 0x2c1   : > { %v332_v56 = vpop.f32.mrf.mxu2  ;;  %v352_v58 = vpop.f32.mrf.mxu3 }
 0x2c2   : > { %v333_v59 = vadd.f32 %v332_v56, %v311_v55  ;;  %v353_v60 = vadd.f32 %v352_v58, %v311_v55 }
 0x2c4   : > { %vm356_vm8 = vcmp.ge.f32.partialorder %v333_v59, 0.0  ;;  %v359_v61 = vmul.f32 %v358_v57, %v333_v59  ;;  %vm357_vm9 = vcmp.ge.f32.partialorder %v353_v60, 0.0  ;;  %v360_v62 = vmul.f32 %v358_v57, %v353_v60 }
 0x2c6   : > { %v361_v63 = vsel %vm356_vm8, %v333_v59, %v359_v61  ;;  %v362_v0 = vsel %vm357_vm9, %v353_v60, %v360_v62 }
 0x2c7   : > { %363 = vst [vmem:[%s184_s18] sm:$0xff] %v361_v63 }
 0x2c8   : > { %364 = vst [vmem:[%s184_s18 + $0x8] sm:$0xff] %v362_v0 }
 0x2c9 PF: > { %s14_s12 = sadd.s32 1, %s505_s12  }
 0x2ca   : > { %p11_p7 = scmp.ge.s32.totalorder %s14_s12, 4  }
 0x2cc   :  { %13 = sbr.rel (!%p11_p7) target bundleno = 1 (0x1), region = 67 }
 0x2d1   :  { %386 = vsyncpa [#allocation3], 1 }
 0x2d2   :  { %388 = vsyncpa [#allocation3 + $0x1], 1 }

</bundles_post_ra>
